<compile_context>
chip_gen: v6e
topology: v6e:2x2x1
jax: 0.10.0
libtpu: 0.0.40
codegen_flags: <defaults>
</compile_context>

<pallas_src>
import jax
import jax.numpy as jnp
from jax.experimental import pallas as pl
from jax.experimental.pallas import tpu as pltpu


def _tile_embed_kernel(x_ref, pos0_ref, posr_ref, o_ref):
    # x_ref:    (TB, n*dim)        flattened tile tokens for TB batches
    # pos0_ref: (1,  dim)          pos_embedding[:, 0] + cls_token (VMEM-resident)
    # posr_ref: (1,  n*dim)        pos_embedding[:, 1:n+1] flattened (VMEM-resident)
    # o_ref:    (TB, (n+1)*dim)
    tb = o_ref.shape[0]
    dim = pos0_ref.shape[1]
    # Two direct slice stores; no concat / sublane relayout. With dim a
    # multiple of 128 both stores are lane-aligned full vregs.
    o_ref[:, :dim] = jnp.broadcast_to(pos0_ref[...], (tb, dim))
    o_ref[:, dim:] = x_ref[...] + posr_ref[...]   # pos broadcast over batch rows
    # TODO(synk): dropout with p > 0 would need pltpu.prng_* masking; p=0.0 -> identity.


def _round_up(v, m):
    return -(-v // m) * m


def _pick_batch_tile(b, n, dim, dtype, target_tile_bytes=3 << 20, min_grid=4):
    """Batch-tile rows per grid step, sized from the *padded* VMEM footprint.

    - Lane extent of one output row is rounded up to 128 (real vreg layout).
    - tb is a multiple of the sublane pack (8 f32 / 16 bf16 / 32 int8) unless
      it equals the full batch (block == full dim is always legal).
    - ~3 MiB output tiles keep double-buffered in+out (~4x tile) under the
      16 MiB v5e scoped-VMEM default and amortize the ~0.35 us/step overhead.
    - tb is shrunk toward >= min_grid grid steps (2 per v7x TensorCore) when
      the batch is large enough, never below one sublane pack.
    """
    itemsize = jnp.dtype(dtype).itemsize
    sub = {4: 8, 2: 16, 1: 32}.get(itemsize, 8)
    per_row_bytes = _round_up((n + 1) * dim, 128) * itemsize
    tb = max(sub, (target_tile_bytes // per_row_bytes) // sub * sub)
    while tb > sub and -(-b // tb) < min_grid:
        tb -= sub
    if tb >= b:
        tb = b
    return tb


def tile_embedder_forward(x, cls_token, pos_embedding):
    """x: (b, n, dim); cls_token: (1, 1, dim); pos_embedding: (1, num_tiles+1, dim)."""
    b, n, dim = x.shape
    assert pos_embedding.shape[1] >= n + 1, (
        f"pos_embedding has {pos_embedding.shape[1]} positions, need {n + 1}")
    pos = pos_embedding[:, : n + 1, :].astype(x.dtype)

    # Fold cls token into pos row 0 once, on the tiny parameter tensors
    # (plain XLA glue; not per grid step).
    pos0 = (pos[:, 0, :] + cls_token[0, 0, :].astype(x.dtype)).reshape(1, dim)
    posr = pos[:, 1:, :].reshape(1, n * dim)
    x2 = x.reshape(b, n * dim)   # free reshape (row-major contiguous)

    tb = _pick_batch_tile(b, n, dim, x.dtype)
    grid = (pl.cdiv(b, tb),)     # ragged last block is fine for elementwise

    # NOTE: standalone this op is a pure ~2*b*(n+1)*dim-byte HBM stream; in
    # production it should be fused into the adjacent patch-projection /
    # first-attention kernel. Kept standalone here to mirror the module
    # boundary.
    out2 = pl.pallas_call(
        _tile_embed_kernel,
        out_shape=jax.ShapeDtypeStruct((b, (n + 1) * dim), x.dtype),
        grid=grid,
        in_specs=[
            pl.BlockSpec((tb, n * dim), lambda i: (i, 0)),        # x: TB batch rows / step
            pl.BlockSpec((1, dim), lambda i: (0, 0)),             # pos row 0 (+cls), shared
            pl.BlockSpec((1, n * dim), lambda i: (0, 0)),         # pos rows 1..n, shared
        ],
        out_specs=pl.BlockSpec((tb, (n + 1) * dim), lambda i: (i, 0)),
        compiler_params=pltpu.CompilerParams(
            dimension_semantics=("parallel",),
        ),
    )(x2, pos0, posr)
    return out2.reshape(b, n + 1, dim)


def _reference(x, cls_token, pos_embedding):
    b, n, _ = x.shape
    cls_tokens = jnp.broadcast_to(cls_token, (b, 1, x.shape[-1]))
    y = jnp.concatenate((cls_tokens, x), axis=1)
    return y + pos_embedding[:, : n + 1, :]


if __name__ == "__main__":
    key = jax.random.PRNGKey(0)

    # Case 1: shapes consistent with the module demo: batch=2, num_tiles=8, dim=32.
    b, num_tiles, dim = 2, 8, 32
    k_x, k_pos, k_cls, key = jax.random.split(key, 4)
    x = jax.random.normal(k_x, (b, num_tiles, dim), dtype=jnp.float32)
    pos_embedding = jax.random.normal(k_pos, (1, num_tiles + 1, dim), dtype=jnp.float32)
    cls_token = jax.random.normal(k_cls, (1, 1, dim), dtype=jnp.float32)

    out = jax.block_until_ready(tile_embedder_forward(x, cls_token, pos_embedding))
    ref = _reference(x, cls_token, pos_embedding)
    assert out.shape == (b, num_tiles + 1, dim), out.shape
    assert jnp.allclose(out, ref, atol=1e-6), "mismatch vs reference (case 1)"

    # Case 2: exercises lane-aligned dim (multiple of 128), multi-step grid and
    # a ragged last batch block (b=10 with tb=8).
    b2, n2, d2 = 10, 4, 128
    k_x2, k_pos2, k_cls2, key = jax.random.split(key, 4)
    x2 = jax.random.normal(k_x2, (b2, n2, d2), dtype=jnp.float32)
    pos2 = jax.random.normal(k_pos2, (1, n2 + 1, d2), dtype=jnp.float32)
    cls2 = jax.random.normal(k_cls2, (1, 1, d2), dtype=jnp.float32)

    out2 = jax.block_until_ready(tile_embedder_forward(x2, cls2, pos2))
    ref2 = _reference(x2, cls2, pos2)
    assert out2.shape == (b2, n2 + 1, d2), out2.shape
    assert jnp.allclose(out2, ref2, atol=1e-6), "mismatch vs reference (case 2)"

    print("KERNEL_OK")
</pallas_src>

<mosaic_0001>
module attributes {stable_mosaic.version = 11 : i64} {
  func.func @_tile_embed_kernel(%arg0: i32, %arg1: memref<2x256xf32, #tpu.memory_space<vmem>>, %arg2: memref<1x32xf32, #tpu.memory_space<vmem>>, %arg3: memref<1x256xf32, #tpu.memory_space<vmem>>, %arg4: memref<2x288xf32, #tpu.memory_space<vmem>>) attributes {dimension_semantics = [#tpu.dimension_semantics<parallel>], iteration_bounds = array<i64: 1>, scalar_prefetch = 0 : i64, scratch_operands = 0 : i64, tpu.core_type = #tpu.core_type<tc>, window_params = [{transform_indices = @transform_0, window_bounds = array<i64: 2, 256>}, {pipeline_mode = #tpu.pipeline_mode<synchronous>, transform_indices = @transform_1, window_bounds = array<i64: 1, 32>}, {pipeline_mode = #tpu.pipeline_mode<synchronous>, transform_indices = @transform_2, window_bounds = array<i64: 1, 256>}, {transform_indices = @transform_3, window_bounds = array<i64: 2, 288>}]} {
    %c0 = arith.constant 0 : index
    %c0_0 = arith.constant 0 : index
    %0 = vector.load %arg2[%c0, %c0_0] : memref<1x32xf32, #tpu.memory_space<vmem>>, vector<1x32xf32>
    %1 = vector.shape_cast %0 : vector<1x32xf32> to vector<1x32xf32>
    %2 = vector.broadcast %1 : vector<1x32xf32> to vector<2x32xf32>
    %c0_1 = arith.constant 0 : index
    %c0_2 = arith.constant 0 : index
    %3 = vector.load %arg4[%c0_1, %c0_2] : memref<2x288xf32, #tpu.memory_space<vmem>>, vector<2x32xf32>
    tpu.vector_store %arg4[%c0_1, %c0_2], %2 {strides = array<i32>} : memref<2x288xf32, #tpu.memory_space<vmem>>, vector<2x32xf32>,
    %c0_3 = arith.constant 0 : index
    %c0_4 = arith.constant 0 : index
    %4 = vector.load %arg1[%c0_3, %c0_4] : memref<2x256xf32, #tpu.memory_space<vmem>>, vector<2x256xf32>
    %c0_5 = arith.constant 0 : index
    %c0_6 = arith.constant 0 : index
    %5 = vector.load %arg3[%c0_5, %c0_6] : memref<1x256xf32, #tpu.memory_space<vmem>>, vector<1x256xf32>
    %6 = vector.broadcast %5 : vector<1x256xf32> to vector<2x256xf32>
    %7 = arith.addf %4, %6 : vector<2x256xf32>
    %c0_7 = arith.constant 0 : index
    %c32 = arith.constant 32 : index
    %8 = vector.load %arg4[%c0_7, %c32] : memref<2x288xf32, #tpu.memory_space<vmem>>, vector<2x256xf32>
    tpu.vector_store %arg4[%c0_7, %c32], %7 {strides = array<i32>} : memref<2x288xf32, #tpu.memory_space<vmem>>, vector<2x256xf32>,
    return
  }
  func.func @transform_0(%arg0: i32) -> (i32, i32) {
    %c0_i32 = arith.constant 0 : i32
    %c0_i32_0 = arith.constant 0 : i32
    return %arg0, %c0_i32 : i32, i32
  }
  func.func @transform_1(%arg0: i32) -> (i32, i32) {
    %c0_i32 = arith.constant 0 : i32
    %c0_i32_0 = arith.constant 0 : i32
    %c0_i32_1 = arith.constant 0 : i32
    return %c0_i32, %c0_i32_0 : i32, i32
  }
  func.func @transform_2(%arg0: i32) -> (i32, i32) {
    %c0_i32 = arith.constant 0 : i32
    %c0_i32_0 = arith.constant 0 : i32
    %c0_i32_1 = arith.constant 0 : i32
    return %c0_i32, %c0_i32_0 : i32, i32
  }
  func.func @transform_3(%arg0: i32) -> (i32, i32) {
    %c0_i32 = arith.constant 0 : i32
    %c0_i32_0 = arith.constant 0 : i32
    return %arg0, %c0_i32 : i32, i32
  }
}

</mosaic_0001>

<bundles_post_ra>
// kernel: tpu_custom_call.1
= control target key start
LH: loop header
LB: loop body
LE: loop exit
PB: predicated region body
PF: predicated region fallthrough
CT: control target
= control target key end

     0   :  { %8 = vsyncpa [#allocation3], 0  ;;  %s170_s0 = inlined_call_operand.hbm [shape: f32[2,256], index: 0, kind: input, shape index: {}]   ;;  %s171_s1 = inlined_call_operand.vmem [shape: f32[1,32], index: 1, kind: input, shape index: {}]   ;;  %s172_s2 = inlined_call_operand.vmem [shape: f32[1,256], index: 2, kind: input, shape index: {}]   ;;  %s173_s3 = inlined_call_operand.hbm [shape: f32[2,288], index: 3, kind: output, shape index: {}]  }
   0x1   :  { %9 = vsyncpa [#allocation4], 0  ;;  %s134_s12 = smov [#allocation2]  }
   0x2   :  { %s16_s13 = sshll.u32 %s134_s12, 4  ;;  %s17_s13 = int_to_ptr.vmem [resolvable:$true] %s16_s13 }
   0x3   :  { %s98_s14 = scalar_lea.vmem %s17_s13, 64  ;;  %p103_p1 = scmp.lt.s32.totalorder %s17_s13, %s17_s13 }
   0x4   :  { %p99_p0 = scmp.ne.s32.totalorder %s17_s13, %s98_s14  ;;  %p104_p2 = scmp.lt.s32.totalorder %s98_s14, %s98_s14 }
   0x6   :  { %p105_p3 = por %p104_p2, %p103_p1 }
   0x8   :  { %p106_p4 = pnand %p105_p3, %p99_p0 }
   0xa   :  { %109 = shalt.err (!%p106_p4)
}
   0xb   :  { %19 = dma.hbm_to_vmem [thread:$0]  %s170_s0, 64, %s17_s13, [#allocation3]  }
   0xc   :  { %130 = dma.done.wait [#allocation3], 64  }
   0xd   :  { %131 = vsyncadd [#allocation3], 4294967232  ;;  %v39_v0 = vlaneseq  ;;  %v135_v1 = vmov 1983009808   ;;  %vm34_vm0 = vcmask 254976   ;;  %s136_s0 = smov 32  }
   0xe   :  { %v49_v2 = vunpack.c.l.s4 %v135_v1  ;;  %v37_v7 = vld [vmem:[%s172_s2] sm:$0x3]  ;;  %vm64_vm1 = vcmask 1041664   ;;  %vm65_vm2 = vcmask 1043458   ;;  %vm67_vm4 = vcmask 259076   ;;  %s137_s21 = smov [#allocation5]  }
   0xf   :  { %v40_v3 = vshrl.u32 %v39_v0, 7  ;;  %v85_v8 = vld [vmem:[%s171_s1] ss:$0 sm:$0xff]  ;;  %vm66_vm3 = vmor %vm65_vm2, %vm64_vm1  ;;  %s76_s2 = sshll.u32 %s137_s21, 4  ;;  %vm61_vm5 = vcmask 261120   ;;  %s77_s2 = int_to_ptr.vmem [resolvable:$true] %s76_s2 }
  0x10   :  { %v50_v6 = vunpack.c.0.s8 %v49_v2  ;;  %35 = vst.msk [vmem:[#allocation5] sm:$0x3] %vm34_vm0, %v85_v8  ;;  %v36_v13 = vld [vmem:[#allocation2] sm:$0xf]  ;;  %vm68_vm6 = vmor %vm67_vm4, %vm66_vm3  ;;  %s110_s1 = scalar_lea.vmem %s77_s2, 96  ;;  %p115_p6 = scmp.lt.s32.totalorder %s77_s2, %s77_s2 }
  0x11   :  { %v41_v4 = vsub.s32 0, %v40_v3  ;;  %v45_v5 = vsub.s32 1, %v40_v3  ;;  %p111_p5 = scmp.ne.s32.totalorder %s77_s2, %s110_s1  ;;  %p116_p7 = scmp.lt.s32.totalorder %s110_s1, %s110_s1 }
  0x12   :  { %v53_v11 = vsub.s32 %v50_v6, %v40_v3 }
  0x13   :  { %v42_v9 = vrot.slane %v37_v7, %v41_v4  ;;  %v46_v10 = vrot.slane %v37_v7, %v45_v5  ;;  %p117_p8 = por %p116_p7, %p115_p6 }
  0x15   :  { %v47_v12 = vcombine.low %v42_v9, %v46_v10  ;;  %p118_p9 = pnand %p117_p8, %p111_p5 }
  0x17   :  { %v54_v14 = vrot.slane %v47_v12, %v53_v11 }
  0x19   :  { %v56_v15 = vadd.f32 %v54_v14, %v36_v13 }
  0x1b   :  { %58 = vrot.lane.b32.xlu0 %v56_v15, %s136_s0 }
  0x8d   :  { %v59_v16 = vpop.permute.xlu0 %58 }
  0x8e   :  { %v60_v17 = vrot.slane %v59_v16, 6 }
  0x90   :  { %v62_v18 = vsel %vm61_vm5, %v60_v17, %v59_v16 }
  0x91   :  { %69 = vst.msk [vmem:[#allocation5] sm:$0x3f] %vm68_vm6, %v62_v18 }
  0x92   :  { %121 = shalt.err (!%p118_p9)
}
  0x93   :  { %79 = dma.vmem_to_hbm [thread:$0]  %s77_s2, 96, %s173_s3, [#allocation4]  }
  0x94   :  { %132 = dma.done.wait [#allocation4], 96  }
  0x95   :  { %133 = vsyncadd [#allocation4], 4294967200 }
  0x96   :  { %83 = vsyncpa [#allocation3], 1 }
  0x97   :  { %84 = vsyncpa [#allocation4], 1 }

</bundles_post_ra>
